<compile_context>
chip_gen: v7x
topology: tpu7x:2x2x1
jax: 0.10.0
libtpu: 0.0.40
codegen_flags: <defaults>
</compile_context>

<pallas_src>
import jax
import jax.numpy as jnp
from jax import lax
from jax.experimental import pallas as pl
from jax.experimental.pallas import tpu as pltpu


# ------------------------------ fused kernel -------------------------------- #

def _make_upblock_kernel(H, W):
    P = H * W

    def kernel(x_ref, m_ref,
               w1_ref, b1_ref, w2_ref, b2_ref, w3_ref, b3_ref,
               w4_ref, b4_ref, w5_ref, b5_ref, w6_ref, b6_ref,
               wsc_ref, bsc_ref, o_ref):
        relu = lambda v: jnp.maximum(v, 0.0)

        def dot(w, a):                       # bf16 MXU operands, f32 accumulate
            return jnp.dot(w, a.astype(jnp.bfloat16),
                           preferred_element_type=jnp.float32)

        m = m_ref[...]                       # (9, P) f32 per-tap validity masks

        def shift(h, dh, dw):
            """out[c, i*W + j] = h[c, i+dh, j+dw] (zero outside the image).

            pltpu.roll wraps around the flat P axis, so the mask must zero BOTH
            the row-boundary (dh) and column-boundary (dw) positions."""
            off = dh * W + dw
            y = h if off == 0 else pltpu.roll(h, shift=(-off) % P, axis=1)
            if (dh, dw) != (0, 0):
                k = (dh + 1) * 3 + (dw + 1)
                y = y * m[k:k + 1]
            return y

        def stack9(h):                       # (C,P) -> (9C,P), tap-major (kh,kw)
            return jnp.concatenate(
                [shift(h, kh - 1, kw - 1) for kh in range(3) for kw in range(3)],
                axis=0)

        def stack4(h):                       # (C,P) -> (4C,P): h, h(0,1), h(1,0), h(1,1)
            return jnp.concatenate(
                [h, shift(h, 0, 1), shift(h, 1, 0), shift(h, 1, 1)], axis=0)

        x = x_ref[0]                                               # (Ci, P)

        h = relu(dot(w1_ref[...], x) + b1_ref[...])                # conv1 (1x1)
        h = relu(dot(w2_ref[...], stack9(h)) + b2_ref[...])        # conv2 (3x3), one K=9*Cb dot
        h = relu(dot(w3_ref[...], h) + b3_ref[...])                # conv3 (1x1)
        h = relu(dot(w4_ref[...], h) + b4_ref[...])                # conv4 (1x1)
        u = relu(dot(w5_ref[...], stack4(h)) + b5_ref[...])        # conv5: all 4 phases (4*Cb, P)

        t = dot(wsc_ref[...], stack4(x)) + bsc_ref[...]            # shortcut: all 4 phases (4*Co, P)

        out = relu(dot(w6_ref[...], u) + b6_ref[...] + t)          # conv6 (block-diag) + residual
        o_ref[0] = out.astype(o_ref.dtype)                         # one (4*Co, P) store

    return kernel


# ------------------------------ UpBlock forward ----------------------------- #

def upblock_forward(x_nchw, p):
    N, Ci, H, W = x_nchw.shape
    P = H * W
    Co = p['conv6_w'].shape[0]
    f32, bf16 = jnp.float32, jnp.bfloat16

    colb = lambda b: b.reshape(-1, 1).astype(f32)

    # Conv2d 3x3 weight (Cout, Cin, 3, 3) -> (Cout, 9*Cin); column block
    # k = kh*3+kw matches stack9's shift(kh-1, kw-1) ordering.
    def conv3x3_stacked(w):
        return jnp.transpose(w, (0, 2, 3, 1)).reshape(w.shape[0], 9 * w.shape[1])

    # ConvTranspose2d(k=3, s=2, p=1, op=1) weight (Cin, Cout, 3, 3) ->
    # stacked phase weight (4*Cout, 4*Cin).  Column blocks follow stack4 order
    # [h, h(0,1), h(1,0), h(1,1)]; row block ph = 2*a + b produces output pixel
    # (2i+a, 2j+b).
    def convT_stacked(w):
        ci, co = w.shape[0], w.shape[1]
        tap = lambda kh, kw: jnp.transpose(w[:, :, kh, kw])     # (Cout, Cin)
        z = jnp.zeros((co, ci), w.dtype)
        rows = [
            [tap(1, 1), z,         z,         z],               # (2i,   2j)
            [tap(1, 2), tap(1, 0), z,         z],               # (2i,   2j+1)
            [tap(2, 1), z,         tap(0, 1), z],               # (2i+1, 2j)
            [tap(2, 2), tap(2, 0), tap(0, 2), tap(0, 0)],       # (2i+1, 2j+1)
        ]
        return jnp.concatenate([jnp.concatenate(r, axis=1) for r in rows], axis=0)

    # Per-tap validity masks (roll wraps -> zero both row and column boundaries).
    row = jnp.arange(P, dtype=jnp.int32) // W
    col = jnp.arange(P, dtype=jnp.int32) % W
    masks = []
    for kh in range(3):
        for kw in range(3):
            dh, dw = kh - 1, kw - 1
            ok = ((row + dh >= 0) & (row + dh < H) &
                  (col + dw >= 0) & (col + dw < W))
            masks.append(ok)
    mask9 = jnp.stack(masks, axis=0).astype(f32)                # (9, P)

    args = [
        x_nchw.reshape(N, Ci, P).astype(f32),                   # free reshape (contiguous)
        mask9,
        p['conv1_w'][:, :, 0, 0].astype(bf16),       colb(p['conv1_b']),
        conv3x3_stacked(p['conv2_w']).astype(bf16),  colb(p['conv2_b']),
        p['conv3_w'][:, :, 0, 0].astype(bf16),       colb(p['conv3_b']),
        p['conv4_w'][:, :, 0, 0].astype(bf16),       colb(p['conv4_b']),
        convT_stacked(p['conv5_w']).astype(bf16),    jnp.tile(colb(p['conv5_b']), (4, 1)),
        jnp.kron(jnp.eye(4, dtype=f32),
                 p['conv6_w'][:, :, 0, 0]).astype(bf16),
                                                     jnp.tile(colb(p['conv6_b']), (4, 1)),
        convT_stacked(p['shortcut_w']).astype(bf16), jnp.tile(colb(p['shortcut_b']), (4, 1)),
    ]

    def resident(a):                        # constant-index, stays in VMEM
        zeros = (0,) * a.ndim
        return pl.BlockSpec(a.shape, lambda n: zeros)

    in_specs = [pl.BlockSpec((1, Ci, P), lambda n: (n, 0, 0))]
    in_specs += [resident(a) for a in args[1:]]

    out4 = pl.pallas_call(
        _make_upblock_kernel(H, W),
        out_shape=jax.ShapeDtypeStruct((N, 4 * Co, P), x_nchw.dtype),
        grid=(N,),
        in_specs=in_specs,
        out_specs=pl.BlockSpec((1, 4 * Co, P), lambda n: (n, 0, 0)),
        compiler_params=pltpu.CompilerParams(
            dimension_semantics=("parallel",)),
    )(*args)

    # depth-to-space: phase (a, b) at pixel (i, j) -> output pixel (2i+a, 2j+b)
    out = out4.reshape(N, 2, 2, Co, H, W)
    out = jnp.transpose(out, (0, 3, 4, 1, 5, 2)).reshape(N, Co, 2 * H, 2 * W)
    return out


# --------------------------- pure-JAX reference ----------------------------- #

def _ref_conv(x_nhwc, w_oihw, b, padding):
    w = jnp.transpose(w_oihw, (2, 3, 1, 0))                      # HWIO
    y = lax.conv_general_dilated(x_nhwc, w, (1, 1), padding,
                                 dimension_numbers=('NHWC', 'HWIO', 'NHWC'))
    return y + b


def _ref_convT(x_nhwc, w_iohw, b):
    w_eq = jnp.transpose(w_iohw[:, :, ::-1, ::-1], (2, 3, 0, 1))  # HWIO
    y = lax.conv_general_dilated(x_nhwc, w_eq, (1, 1), [(1, 2), (1, 2)],
                                 lhs_dilation=(2, 2),
                                 dimension_numbers=('NHWC', 'HWIO', 'NHWC'))
    return y + b


def upblock_ref(x_nchw, p):
    relu = lambda v: jnp.maximum(v, 0.0)
    x = jnp.transpose(x_nchw, (0, 2, 3, 1))
    t = _ref_convT(x, p['shortcut_w'], p['shortcut_b'])
    h = relu(_ref_conv(x, p['conv1_w'], p['conv1_b'], [(0, 0), (0, 0)]))
    h = relu(_ref_conv(h, p['conv2_w'], p['conv2_b'], [(1, 1), (1, 1)]))
    h = relu(_ref_conv(h, p['conv3_w'], p['conv3_b'], [(0, 0), (0, 0)]))
    h = relu(_ref_conv(h, p['conv4_w'], p['conv4_b'], [(0, 0), (0, 0)]))
    h = relu(_ref_convT(h, p['conv5_w'], p['conv5_b']))
    out = relu(_ref_conv(h, p['conv6_w'], p['conv6_b'], [(0, 0), (0, 0)]) + t)
    return jnp.transpose(out, (0, 3, 1, 2))


# ----------------------------------- main ----------------------------------- #

if __name__ == "__main__":
    key = jax.random.PRNGKey(0)
    batch, ci, cb, co, hw = 2, 4, 8, 4, 16
    ks = jax.random.split(key, 16)

    def init(k, shape, scale=0.1):
        return scale * jax.random.normal(k, shape, dtype=jnp.float32)

    params = {
        'shortcut_w': init(ks[0], (ci, co, 3, 3)), 'shortcut_b': init(ks[1], (co,)),
        'conv1_w':    init(ks[2], (cb, ci, 1, 1)), 'conv1_b':    init(ks[3], (cb,)),
        'conv2_w':    init(ks[4], (cb, cb, 3, 3)), 'conv2_b':    init(ks[5], (cb,)),
        'conv3_w':    init(ks[6], (co, cb, 1, 1)), 'conv3_b':    init(ks[7], (co,)),
        'conv4_w':    init(ks[8], (cb, co, 1, 1)), 'conv4_b':    init(ks[9], (cb,)),
        'conv5_w':    init(ks[10], (cb, cb, 3, 3)), 'conv5_b':   init(ks[11], (cb,)),
        'conv6_w':    init(ks[12], (co, cb, 1, 1)), 'conv6_b':   init(ks[13], (co,)),
    }

    x = jax.random.normal(ks[14], (batch, ci, hw, hw), dtype=jnp.float32)

    out = jax.jit(upblock_forward)(x, params)
    out = jax.block_until_ready(out)
    assert out.shape == (batch, co, 2 * hw, 2 * hw), out.shape

    ref = jax.block_until_ready(upblock_ref(x, params))
    # bf16 MXU operands (f32 accumulation) -> relaxed tolerance vs f32 reference.
    assert jnp.allclose(out, ref, rtol=3e-2, atol=3e-2), \
        float(jnp.max(jnp.abs(out - ref)))

    print("KERNEL_OK")
</pallas_src>

<mosaic_0001>
module attributes {stable_mosaic.version = 11 : i64} {
  func.func @kernel(%arg0: i32, %arg1: memref<1x4x256xf32, #tpu.memory_space<vmem>>, %arg2: memref<9x256xf32, #tpu.memory_space<vmem>>, %arg3: memref<8x4xbf16, #tpu.memory_space<vmem>>, %arg4: memref<8x1xf32, #tpu.memory_space<vmem>>, %arg5: memref<8x72xbf16, #tpu.memory_space<vmem>>, %arg6: memref<8x1xf32, #tpu.memory_space<vmem>>, %arg7: memref<4x8xbf16, #tpu.memory_space<vmem>>, %arg8: memref<4x1xf32, #tpu.memory_space<vmem>>, %arg9: memref<8x4xbf16, #tpu.memory_space<vmem>>, %arg10: memref<8x1xf32, #tpu.memory_space<vmem>>, %arg11: memref<32x32xbf16, #tpu.memory_space<vmem>>, %arg12: memref<32x1xf32, #tpu.memory_space<vmem>>, %arg13: memref<16x32xbf16, #tpu.memory_space<vmem>>, %arg14: memref<16x1xf32, #tpu.memory_space<vmem>>, %arg15: memref<16x16xbf16, #tpu.memory_space<vmem>>, %arg16: memref<16x1xf32, #tpu.memory_space<vmem>>, %arg17: memref<1x16x256xf32, #tpu.memory_space<vmem>>) attributes {dimension_semantics = [#tpu.dimension_semantics<parallel>], iteration_bounds = array<i64: 2>, scalar_prefetch = 0 : i64, scratch_operands = 0 : i64, tpu.core_type = #tpu.core_type<tc>, window_params = [{transform_indices = @transform_0, window_bounds = array<i64: 1, 4, 256>}, {pipeline_mode = #tpu.pipeline_mode<synchronous>, transform_indices = @transform_1, window_bounds = array<i64: 9, 256>}, {pipeline_mode = #tpu.pipeline_mode<synchronous>, transform_indices = @transform_2, window_bounds = array<i64: 8, 4>}, {pipeline_mode = #tpu.pipeline_mode<synchronous>, transform_indices = @transform_3, window_bounds = array<i64: 8, 1>}, {pipeline_mode = #tpu.pipeline_mode<synchronous>, transform_indices = @transform_4, window_bounds = array<i64: 8, 72>}, {pipeline_mode = #tpu.pipeline_mode<synchronous>, transform_indices = @transform_5, window_bounds = array<i64: 8, 1>}, {pipeline_mode = #tpu.pipeline_mode<synchronous>, transform_indices = @transform_6, window_bounds = array<i64: 4, 8>}, {pipeline_mode = #tpu.pipeline_mode<synchronous>, transform_indices = @transform_7, window_bounds = array<i64: 4, 1>}, {pipeline_mode = #tpu.pipeline_mode<synchronous>, transform_indices = @transform_8, window_bounds = array<i64: 8, 4>}, {pipeline_mode = #tpu.pipeline_mode<synchronous>, transform_indices = @transform_9, window_bounds = array<i64: 8, 1>}, {pipeline_mode = #tpu.pipeline_mode<synchronous>, transform_indices = @transform_10, window_bounds = array<i64: 32, 32>}, {pipeline_mode = #tpu.pipeline_mode<synchronous>, transform_indices = @transform_11, window_bounds = array<i64: 32, 1>}, {pipeline_mode = #tpu.pipeline_mode<synchronous>, transform_indices = @transform_12, window_bounds = array<i64: 16, 32>}, {pipeline_mode = #tpu.pipeline_mode<synchronous>, transform_indices = @transform_13, window_bounds = array<i64: 16, 1>}, {pipeline_mode = #tpu.pipeline_mode<synchronous>, transform_indices = @transform_14, window_bounds = array<i64: 16, 16>}, {pipeline_mode = #tpu.pipeline_mode<synchronous>, transform_indices = @transform_15, window_bounds = array<i64: 16, 1>}, {transform_indices = @transform_16, window_bounds = array<i64: 1, 16, 256>}]} {
    %c0 = arith.constant 0 : index
    %c0_0 = arith.constant 0 : index
    %0 = vector.load %arg2[%c0, %c0_0] : memref<9x256xf32, #tpu.memory_space<vmem>>, vector<9x256xf32>
    %c0_1 = arith.constant 0 : index
    %c0_2 = arith.constant 0 : index
    %c0_3 = arith.constant 0 : index
    %1 = vector.load %arg1[%c0_1, %c0_2, %c0_3] : memref<1x4x256xf32, #tpu.memory_space<vmem>>, vector<1x4x256xf32>
    %2 = vector.shape_cast %1 : vector<1x4x256xf32> to vector<4x256xf32>
    %c0_4 = arith.constant 0 : index
    %c0_5 = arith.constant 0 : index
    %3 = vector.load %arg3[%c0_4, %c0_5] : memref<8x4xbf16, #tpu.memory_space<vmem>>, vector<8x4xbf16>
    %4 = arith.truncf %2 : vector<4x256xf32> to vector<4x256xbf16>
    %cst = arith.constant dense<0.000000e+00> : vector<8x256xf32>
    %5 = tpu.matmul %3, %4, %cst {dimension_numbers = #tpu.dot_dimension_numbers<[1], [0], [0], [1], [0, 0, 1, 1], [], []>} : vector<8x4xbf16>, vector<4x256xbf16>, vector<8x256xf32> -> vector<8x256xf32>
    %c0_6 = arith.constant 0 : index
    %c0_7 = arith.constant 0 : index
    %6 = vector.load %arg4[%c0_6, %c0_7] : memref<8x1xf32, #tpu.memory_space<vmem>>, vector<8x1xf32>
    %7 = vector.broadcast %6 : vector<8x1xf32> to vector<8x256xf32>
    %8 = arith.addf %5, %7 : vector<8x256xf32>
    %cst_8 = arith.constant 0.000000e+00 : f32
    %9 = vector.broadcast %cst_8 : f32 to vector<8x256xf32>
    %10 = arith.maximumf %8, %9 : vector<8x256xf32>
    %c0_9 = arith.constant 0 : index
    %c0_10 = arith.constant 0 : index
    %11 = vector.load %arg5[%c0_9, %c0_10] : memref<8x72xbf16, #tpu.memory_space<vmem>>, vector<8x72xbf16>
    %c17_i32 = arith.constant 17 : i32
    %12 = tpu.dynamic_rotate %10 by %c17_i32 dim 1 : vector<8x256xf32>, i32 -> vector<8x256xf32>
    %13 = vector.extract_strided_slice %0 {offsets = [0, 0], sizes = [1, 256], strides = [1, 1]} : vector<9x256xf32> to vector<1x256xf32>
    %14 = vector.broadcast %13 : vector<1x256xf32> to vector<8x256xf32>
    %15 = arith.mulf %12, %14 : vector<8x256xf32>
    %c16_i32 = arith.constant 16 : i32
    %16 = tpu.dynamic_rotate %10 by %c16_i32 dim 1 : vector<8x256xf32>, i32 -> vector<8x256xf32>
    %17 = vector.extract_strided_slice %0 {offsets = [1, 0], sizes = [1, 256], strides = [1, 1]} : vector<9x256xf32> to vector<1x256xf32>
    %18 = vector.broadcast %17 : vector<1x256xf32> to vector<8x256xf32>
    %19 = arith.mulf %16, %18 : vector<8x256xf32>
    %c15_i32 = arith.constant 15 : i32
    %20 = tpu.dynamic_rotate %10 by %c15_i32 dim 1 : vector<8x256xf32>, i32 -> vector<8x256xf32>
    %21 = vector.extract_strided_slice %0 {offsets = [2, 0], sizes = [1, 256], strides = [1, 1]} : vector<9x256xf32> to vector<1x256xf32>
    %22 = vector.broadcast %21 : vector<1x256xf32> to vector<8x256xf32>
    %23 = arith.mulf %20, %22 : vector<8x256xf32>
    %c1_i32 = arith.constant 1 : i32
    %24 = tpu.dynamic_rotate %10 by %c1_i32 dim 1 : vector<8x256xf32>, i32 -> vector<8x256xf32>
    %25 = vector.extract_strided_slice %0 {offsets = [3, 0], sizes = [1, 256], strides = [1, 1]} : vector<9x256xf32> to vector<1x256xf32>
    %26 = vector.broadcast %25 : vector<1x256xf32> to vector<8x256xf32>
    %27 = arith.mulf %24, %26 : vector<8x256xf32>
    %c255_i32 = arith.constant 255 : i32
    %28 = tpu.dynamic_rotate %10 by %c255_i32 dim 1 : vector<8x256xf32>, i32 -> vector<8x256xf32>
    %29 = vector.extract_strided_slice %0 {offsets = [5, 0], sizes = [1, 256], strides = [1, 1]} : vector<9x256xf32> to vector<1x256xf32>
    %30 = vector.broadcast %29 : vector<1x256xf32> to vector<8x256xf32>
    %31 = arith.mulf %28, %30 : vector<8x256xf32>
    %c241_i32 = arith.constant 241 : i32
    %32 = tpu.dynamic_rotate %10 by %c241_i32 dim 1 : vector<8x256xf32>, i32 -> vector<8x256xf32>
    %33 = vector.extract_strided_slice %0 {offsets = [6, 0], sizes = [1, 256], strides = [1, 1]} : vector<9x256xf32> to vector<1x256xf32>
    %34 = vector.broadcast %33 : vector<1x256xf32> to vector<8x256xf32>
    %35 = arith.mulf %32, %34 : vector<8x256xf32>
    %c240_i32 = arith.constant 240 : i32
    %36 = tpu.dynamic_rotate %10 by %c240_i32 dim 1 : vector<8x256xf32>, i32 -> vector<8x256xf32>
    %37 = vector.extract_strided_slice %0 {offsets = [7, 0], sizes = [1, 256], strides = [1, 1]} : vector<9x256xf32> to vector<1x256xf32>
    %38 = vector.broadcast %37 : vector<1x256xf32> to vector<8x256xf32>
    %39 = arith.mulf %36, %38 : vector<8x256xf32>
    %c239_i32 = arith.constant 239 : i32
    %40 = tpu.dynamic_rotate %10 by %c239_i32 dim 1 : vector<8x256xf32>, i32 -> vector<8x256xf32>
    %41 = vector.extract_strided_slice %0 {offsets = [8, 0], sizes = [1, 256], strides = [1, 1]} : vector<9x256xf32> to vector<1x256xf32>
    %42 = vector.broadcast %41 : vector<1x256xf32> to vector<8x256xf32>
    %43 = arith.mulf %40, %42 : vector<8x256xf32>
    %44 = tpu.concatenate %15, %19, %23, %27, %10, %31, %35, %39, %43 in 0 : vector<8x256xf32>, vector<8x256xf32>, vector<8x256xf32>, vector<8x256xf32>, vector<8x256xf32>, vector<8x256xf32>, vector<8x256xf32>, vector<8x256xf32>, vector<8x256xf32> -> vector<72x256xf32>
    %45 = arith.truncf %44 : vector<72x256xf32> to vector<72x256xbf16>
    %cst_11 = arith.constant dense<0.000000e+00> : vector<8x256xf32>
    %46 = tpu.matmul %11, %45, %cst_11 {dimension_numbers = #tpu.dot_dimension_numbers<[1], [0], [0], [1], [0, 0, 1, 1], [], []>} : vector<8x72xbf16>, vector<72x256xbf16>, vector<8x256xf32> -> vector<8x256xf32>
    %c0_12 = arith.constant 0 : index
    %c0_13 = arith.constant 0 : index
    %47 = vector.load %arg6[%c0_12, %c0_13] : memref<8x1xf32, #tpu.memory_space<vmem>>, vector<8x1xf32>
    %48 = vector.broadcast %47 : vector<8x1xf32> to vector<8x256xf32>
    %49 = arith.addf %46, %48 : vector<8x256xf32>
    %cst_14 = arith.constant 0.000000e+00 : f32
    %50 = vector.broadcast %cst_14 : f32 to vector<8x256xf32>
    %51 = arith.maximumf %49, %50 : vector<8x256xf32>
    %c0_15 = arith.constant 0 : index
    %c0_16 = arith.constant 0 : index
    %52 = vector.load %arg7[%c0_15, %c0_16] : memref<4x8xbf16, #tpu.memory_space<vmem>>, vector<4x8xbf16>
    %53 = arith.truncf %51 : vector<8x256xf32> to vector<8x256xbf16>
    %cst_17 = arith.constant dense<0.000000e+00> : vector<4x256xf32>
    %54 = tpu.matmul %52, %53, %cst_17 {dimension_numbers = #tpu.dot_dimension_numbers<[1], [0], [0], [1], [0, 0, 1, 1], [], []>} : vector<4x8xbf16>, vector<8x256xbf16>, vector<4x256xf32> -> vector<4x256xf32>
    %c0_18 = arith.constant 0 : index
    %c0_19 = arith.constant 0 : index
    %55 = vector.load %arg8[%c0_18, %c0_19] : memref<4x1xf32, #tpu.memory_space<vmem>>, vector<4x1xf32>
    %56 = vector.broadcast %55 : vector<4x1xf32> to vector<4x256xf32>
    %57 = arith.addf %54, %56 : vector<4x256xf32>
    %cst_20 = arith.constant 0.000000e+00 : f32
    %58 = vector.broadcast %cst_20 : f32 to vector<4x256xf32>
    %59 = arith.maximumf %57, %58 : vector<4x256xf32>
    %c0_21 = arith.constant 0 : index
    %c0_22 = arith.constant 0 : index
    %60 = vector.load %arg9[%c0_21, %c0_22] : memref<8x4xbf16, #tpu.memory_space<vmem>>, vector<8x4xbf16>
    %61 = arith.truncf %59 : vector<4x256xf32> to vector<4x256xbf16>
    %cst_23 = arith.constant dense<0.000000e+00> : vector<8x256xf32>
    %62 = tpu.matmul %60, %61, %cst_23 {dimension_numbers = #tpu.dot_dimension_numbers<[1], [0], [0], [1], [0, 0, 1, 1], [], []>} : vector<8x4xbf16>, vector<4x256xbf16>, vector<8x256xf32> -> vector<8x256xf32>
    %c0_24 = arith.constant 0 : index
    %c0_25 = arith.constant 0 : index
    %63 = vector.load %arg10[%c0_24, %c0_25] : memref<8x1xf32, #tpu.memory_space<vmem>>, vector<8x1xf32>
    %64 = vector.broadcast %63 : vector<8x1xf32> to vector<8x256xf32>
    %65 = arith.addf %62, %64 : vector<8x256xf32>
    %cst_26 = arith.constant 0.000000e+00 : f32
    %66 = vector.broadcast %cst_26 : f32 to vector<8x256xf32>
    %67 = arith.maximumf %65, %66 : vector<8x256xf32>
    %c0_27 = arith.constant 0 : index
    %c0_28 = arith.constant 0 : index
    %68 = vector.load %arg11[%c0_27, %c0_28] : memref<32x32xbf16, #tpu.memory_space<vmem>>, vector<32x32xbf16>
    %c255_i32_29 = arith.constant 255 : i32
    %69 = tpu.dynamic_rotate %67 by %c255_i32_29 dim 1 : vector<8x256xf32>, i32 -> vector<8x256xf32>
    %70 = vector.extract_strided_slice %0 {offsets = [5, 0], sizes = [1, 256], strides = [1, 1]} : vector<9x256xf32> to vector<1x256xf32>
    %71 = vector.broadcast %70 : vector<1x256xf32> to vector<8x256xf32>
    %72 = arith.mulf %69, %71 : vector<8x256xf32>
    %c240_i32_30 = arith.constant 240 : i32
    %73 = tpu.dynamic_rotate %67 by %c240_i32_30 dim 1 : vector<8x256xf32>, i32 -> vector<8x256xf32>
    %74 = vector.extract_strided_slice %0 {offsets = [7, 0], sizes = [1, 256], strides = [1, 1]} : vector<9x256xf32> to vector<1x256xf32>
    %75 = vector.broadcast %74 : vector<1x256xf32> to vector<8x256xf32>
    %76 = arith.mulf %73, %75 : vector<8x256xf32>
    %c239_i32_31 = arith.constant 239 : i32
    %77 = tpu.dynamic_rotate %67 by %c239_i32_31 dim 1 : vector<8x256xf32>, i32 -> vector<8x256xf32>
    %78 = vector.extract_strided_slice %0 {offsets = [8, 0], sizes = [1, 256], strides = [1, 1]} : vector<9x256xf32> to vector<1x256xf32>
    %79 = vector.broadcast %78 : vector<1x256xf32> to vector<8x256xf32>
    %80 = arith.mulf %77, %79 : vector<8x256xf32>
    %81 = tpu.concatenate %67, %72, %76, %80 in 0 : vector<8x256xf32>, vector<8x256xf32>, vector<8x256xf32>, vector<8x256xf32> -> vector<32x256xf32>
    %82 = arith.truncf %81 : vector<32x256xf32> to vector<32x256xbf16>
    %cst_32 = arith.constant dense<0.000000e+00> : vector<32x256xf32>
    %83 = tpu.matmul %68, %82, %cst_32 {dimension_numbers = #tpu.dot_dimension_numbers<[1], [0], [0], [1], [0, 0, 1, 1], [], []>} : vector<32x32xbf16>, vector<32x256xbf16>, vector<32x256xf32> -> vector<32x256xf32>
    %c0_33 = arith.constant 0 : index
    %c0_34 = arith.constant 0 : index
    %84 = vector.load %arg12[%c0_33, %c0_34] : memref<32x1xf32, #tpu.memory_space<vmem>>, vector<32x1xf32>
    %85 = vector.broadcast %84 : vector<32x1xf32> to vector<32x256xf32>
    %86 = arith.addf %83, %85 : vector<32x256xf32>
    %cst_35 = arith.constant 0.000000e+00 : f32
    %87 = vector.broadcast %cst_35 : f32 to vector<32x256xf32>
    %88 = arith.maximumf %86, %87 : vector<32x256xf32>
    %c0_36 = arith.constant 0 : index
    %c0_37 = arith.constant 0 : index
    %89 = vector.load %arg15[%c0_36, %c0_37] : memref<16x16xbf16, #tpu.memory_space<vmem>>, vector<16x16xbf16>
    %c255_i32_38 = arith.constant 255 : i32
    %90 = tpu.dynamic_rotate %2 by %c255_i32_38 dim 1 : vector<4x256xf32>, i32 -> vector<4x256xf32>
    %91 = vector.extract_strided_slice %0 {offsets = [5, 0], sizes = [1, 256], strides = [1, 1]} : vector<9x256xf32> to vector<1x256xf32>
    %92 = vector.broadcast %91 : vector<1x256xf32> to vector<4x256xf32>
    %93 = arith.mulf %90, %92 : vector<4x256xf32>
    %c240_i32_39 = arith.constant 240 : i32
    %94 = tpu.dynamic_rotate %2 by %c240_i32_39 dim 1 : vector<4x256xf32>, i32 -> vector<4x256xf32>
    %95 = vector.extract_strided_slice %0 {offsets = [7, 0], sizes = [1, 256], strides = [1, 1]} : vector<9x256xf32> to vector<1x256xf32>
    %96 = vector.broadcast %95 : vector<1x256xf32> to vector<4x256xf32>
    %97 = arith.mulf %94, %96 : vector<4x256xf32>
    %c239_i32_40 = arith.constant 239 : i32
    %98 = tpu.dynamic_rotate %2 by %c239_i32_40 dim 1 : vector<4x256xf32>, i32 -> vector<4x256xf32>
    %99 = vector.extract_strided_slice %0 {offsets = [8, 0], sizes = [1, 256], strides = [1, 1]} : vector<9x256xf32> to vector<1x256xf32>
    %100 = vector.broadcast %99 : vector<1x256xf32> to vector<4x256xf32>
    %101 = arith.mulf %98, %100 : vector<4x256xf32>
    %102 = tpu.concatenate %2, %93, %97, %101 in 0 : vector<4x256xf32>, vector<4x256xf32>, vector<4x256xf32>, vector<4x256xf32> -> vector<16x256xf32>
    %103 = arith.truncf %102 : vector<16x256xf32> to vector<16x256xbf16>
    %cst_41 = arith.constant dense<0.000000e+00> : vector<16x256xf32>
    %104 = tpu.matmul %89, %103, %cst_41 {dimension_numbers = #tpu.dot_dimension_numbers<[1], [0], [0], [1], [0, 0, 1, 1], [], []>} : vector<16x16xbf16>, vector<16x256xbf16>, vector<16x256xf32> -> vector<16x256xf32>
    %c0_42 = arith.constant 0 : index
    %c0_43 = arith.constant 0 : index
    %105 = vector.load %arg16[%c0_42, %c0_43] : memref<16x1xf32, #tpu.memory_space<vmem>>, vector<16x1xf32>
    %106 = vector.broadcast %105 : vector<16x1xf32> to vector<16x256xf32>
    %107 = arith.addf %104, %106 : vector<16x256xf32>
    %c0_44 = arith.constant 0 : index
    %c0_45 = arith.constant 0 : index
    %108 = vector.load %arg13[%c0_44, %c0_45] : memref<16x32xbf16, #tpu.memory_space<vmem>>, vector<16x32xbf16>
    %109 = arith.truncf %88 : vector<32x256xf32> to vector<32x256xbf16>
    %cst_46 = arith.constant dense<0.000000e+00> : vector<16x256xf32>
    %110 = tpu.matmul %108, %109, %cst_46 {dimension_numbers = #tpu.dot_dimension_numbers<[1], [0], [0], [1], [0, 0, 1, 1], [], []>} : vector<16x32xbf16>, vector<32x256xbf16>, vector<16x256xf32> -> vector<16x256xf32>
    %c0_47 = arith.constant 0 : index
    %c0_48 = arith.constant 0 : index
    %111 = vector.load %arg14[%c0_47, %c0_48] : memref<16x1xf32, #tpu.memory_space<vmem>>, vector<16x1xf32>
    %112 = vector.broadcast %111 : vector<16x1xf32> to vector<16x256xf32>
    %113 = arith.addf %110, %112 : vector<16x256xf32>
    %114 = arith.addf %113, %107 : vector<16x256xf32>
    %cst_49 = arith.constant 0.000000e+00 : f32
    %115 = vector.broadcast %cst_49 : f32 to vector<16x256xf32>
    %116 = arith.maximumf %114, %115 : vector<16x256xf32>
    %c0_50 = arith.constant 0 : index
    %c0_51 = arith.constant 0 : index
    %c0_52 = arith.constant 0 : index
    %117 = vector.load %arg17[%c0_50, %c0_51, %c0_52] : memref<1x16x256xf32, #tpu.memory_space<vmem>>, vector<1x16x256xf32>
    %118 = vector.shape_cast %117 : vector<1x16x256xf32> to vector<16x256xf32>
    %119 = vector.shape_cast %116 : vector<16x256xf32> to vector<1x16x256xf32>
    tpu.vector_store %arg17[%c0_50, %c0_51, %c0_52], %119 {strides = array<i32>} : memref<1x16x256xf32, #tpu.memory_space<vmem>>, vector<1x16x256xf32>,
    return
  }
  func.func @transform_0(%arg0: i32) -> (i32, i32, i32) {
    %c0_i32 = arith.constant 0 : i32
    %c0_i32_0 = arith.constant 0 : i32
    %c0_i32_1 = arith.constant 0 : i32
    return %arg0, %c0_i32, %c0_i32_0 : i32, i32, i32
  }
  func.func @transform_1(%arg0: i32) -> (i32, i32) {
    %c0_i32 = arith.constant 0 : i32
    %c0_i32_0 = arith.constant 0 : i32
    %c0_i32_1 = arith.constant 0 : i32
    return %c0_i32, %c0_i32_0 : i32, i32
  }
  func.func @transform_2(%arg0: i32) -> (i32, i32) {
    %c0_i32 = arith.constant 0 : i32
    %c0_i32_0 = arith.constant 0 : i32
    %c0_i32_1 = arith.constant 0 : i32
    return %c0_i32, %c0_i32_0 : i32, i32
  }
  func.func @transform_3(%arg0: i32) -> (i32, i32) {
    %c0_i32 = arith.constant 0 : i32
    %c0_i32_0 = arith.constant 0 : i32
    %c0_i32_1 = arith.constant 0 : i32
    return %c0_i32, %c0_i32_0 : i32, i32
  }
  func.func @transform_4(%arg0: i32) -> (i32, i32) {
    %c0_i32 = arith.constant 0 : i32
    %c0_i32_0 = arith.constant 0 : i32
    %c0_i32_1 = arith.constant 0 : i32
    return %c0_i32, %c0_i32_0 : i32, i32
  }
  func.func @transform_5(%arg0: i32) -> (i32, i32) {
    %c0_i32 = arith.constant 0 : i32
    %c0_i32_0 = arith.constant 0 : i32
    %c0_i32_1 = arith.constant 0 : i32
    return %c0_i32, %c0_i32_0 : i32, i32
  }
  func.func @transform_6(%arg0: i32) -> (i32, i32) {
    %c0_i32 = arith.constant 0 : i32
    %c0_i32_0 = arith.constant 0 : i32
    %c0_i32_1 = arith.constant 0 : i32
    return %c0_i32, %c0_i32_0 : i32, i32
  }
  func.func @transform_7(%arg0: i32) -> (i32, i32) {
    %c0_i32 = arith.constant 0 : i32
    %c0_i32_0 = arith.constant 0 : i32
    %c0_i32_1 = arith.constant 0 : i32
    return %c0_i32, %c0_i32_0 : i32, i32
  }
  func.func @transform_8(%arg0: i32) -> (i32, i32) {
    %c0_i32 = arith.constant 0 : i32
    %c0_i32_0 = arith.constant 0 : i32
    %c0_i32_1 = arith.constant 0 : i32
    return %c0_i32, %c0_i32_0 : i32, i32
  }
  func.func @transform_9(%arg0: i32) -> (i32, i32) {
    %c0_i32 = arith.constant 0 : i32
    %c0_i32_0 = arith.constant 0 : i32
    %c0_i32_1 = arith.constant 0 : i32
    return %c0_i32, %c0_i32_0 : i32, i32
  }
  func.func @transform_10(%arg0: i32) -> (i32, i32) {
    %c0_i32 = arith.constant 0 : i32
    %c0_i32_0 = arith.constant 0 : i32
    %c0_i32_1 = arith.constant 0 : i32
    return %c0_i32, %c0_i32_0 : i32, i32
  }
  func.func @transform_11(%arg0: i32) -> (i32, i32) {
    %c0_i32 = arith.constant 0 : i32
    %c0_i32_0 = arith.constant 0 : i32
    %c0_i32_1 = arith.constant 0 : i32
    return %c0_i32, %c0_i32_0 : i32, i32
  }
  func.func @transform_12(%arg0: i32) -> (i32, i32) {
    %c0_i32 = arith.constant 0 : i32
    %c0_i32_0 = arith.constant 0 : i32
    %c0_i32_1 = arith.constant 0 : i32
    return %c0_i32, %c0_i32_0 : i32, i32
  }
  func.func @transform_13(%arg0: i32) -> (i32, i32) {
    %c0_i32 = arith.constant 0 : i32
    %c0_i32_0 = arith.constant 0 : i32
    %c0_i32_1 = arith.constant 0 : i32
    return %c0_i32, %c0_i32_0 : i32, i32
  }
  func.func @transform_14(%arg0: i32) -> (i32, i32) {
    %c0_i32 = arith.constant 0 : i32
    %c0_i32_0 = arith.constant 0 : i32
    %c0_i32_1 = arith.constant 0 : i32
    return %c0_i32, %c0_i32_0 : i32, i32
  }
  func.func @transform_15(%arg0: i32) -> (i32, i32) {
    %c0_i32 = arith.constant 0 : i32
    %c0_i32_0 = arith.constant 0 : i32
    %c0_i32_1 = arith.constant 0 : i32
    return %c0_i32, %c0_i32_0 : i32, i32
  }
  func.func @transform_16(%arg0: i32) -> (i32, i32, i32) {
    %c0_i32 = arith.constant 0 : i32
    %c0_i32_0 = arith.constant 0 : i32
    %c0_i32_1 = arith.constant 0 : i32
    return %arg0, %c0_i32, %c0_i32_0 : i32, i32, i32
  }
}

</mosaic_0001>

<bundles_post_ra>
// kernel: upblock_forward.1
= control target key start
LH: loop header
LB: loop body
LE: loop exit
PB: predicated region body
PF: predicated region fallthrough
CT: control target
= control target key end

     0   :  { %s1473_s21 = smov 0   ;;  %s1762_s0 = inlined_call_operand.vmem [shape: f32[2,4,256], index: 0, kind: input, shape index: {}]   ;;  %s1763_s1 = inlined_call_operand.vmem [shape: f32[9,256], index: 1, kind: input, shape index: {}]   ;;  %s1764_s2 = inlined_call_operand.vmem [shape: bf16[8,4], index: 2, kind: input, shape index: {}]   ;;  %s1765_s3 = inlined_call_operand.vmem [shape: f32[8,1], index: 3, kind: input, shape index: {}]   ;;  %s1766_s4 = inlined_call_operand.vmem [shape: bf16[8,72], index: 4, kind: input, shape index: {}]   ;;  %s1767_s5 = inlined_call_operand.vmem [shape: f32[8,1], index: 5, kind: input, shape index: {}]   ;;  %s1768_s6 = inlined_call_operand.vmem [shape: bf16[4,8], index: 6, kind: input, shape index: {}]   ;;  %s1769_s7 = inlined_call_operand.vmem [shape: f32[4,1], index: 7, kind: input, shape index: {}]   ;;  %s1770_s8 = inlined_call_operand.vmem [shape: bf16[8,4], index: 8, kind: input, shape index: {}]   ;;  %s1771_s9 = inlined_call_operand.vmem [shape: f32[8,1], index: 9, kind: input, shape index: {}]   ;;  %s1772_s10 = inlined_call_operand.vmem [shape: bf16[32,32], index: 10, kind: input, shape index: {}]   ;;  %s1773_s11 = inlined_call_operand.vmem [shape: f32[32,1], index: 11, kind: input, shape index: {}]   ;;  %s1774_s12 = inlined_call_operand.vmem [shape: bf16[16,32], index: 12, kind: input, shape index: {}]   ;;  %s1775_s13 = inlined_call_operand.vmem [shape: f32[16,1], index: 13, kind: input, shape index: {}]   ;;  %s1776_s14 = inlined_call_operand.vmem [shape: bf16[16,16], index: 14, kind: input, shape index: {}]   ;;  %s1777_s15 = inlined_call_operand.vmem [shape: f32[16,1], index: 15, kind: input, shape index: {}]   ;;  %s1778_s16 = inlined_call_operand.vmem [shape: f32[2,16,256], index: 16, kind: output, shape index: {}]  }
   0x1   :  { %1779 = sst [smem:[#allocation2_spill]] %s1762_s0 }
   0x2 LB: > { %s1304_s22 = sadd.s32 4294967295, %s1377_s21   ;;  %p1308_p0 = scmp.ge.s32.totalorder %s1377_s21, 1  ;;  %s1377_s21 = sphi %s1473_s21, %s26_s21  }
   0x3   : > { %p462_p1 = scmp.lt.s32.totalorder %s1377_s21, 3 }
   0x5   : > { %p463_p2 = pnand %p1308_p0, %p462_p1 }
   0x6   : > { %p512_p3 = scmp.lt.s32.totalorder (!%p463_p2), %s1304_s22, 1  ;;  %v1379_v0 = vmov (!%p463_p2), 0   ;;  %v534_v1 = vld [vmem:[%s1765_s3] sm:$0xff] (!%p463_p2)  ;;  %s1780_s28 = sld [smem:[#allocation2_spill]] (!%p463_p2)  ;;  %vm544_vm0 = vcmask (!%p463_p2), 1041408   ;;  %vm540_vm1 = vcmask (!%p463_p2), 31744   ;;  %v599_v20 = vlaneseq (!%p463_p2) }
   0x7   : > { %466 = sbr.rel (%p463_p2) target bundleno = 1642 (0x66a), region = 84  ;;  %583 = vmatprep.mubr.bf16.mxu0 (!%p463_p2), %v1379_v0  ;;  %1364 = vset.pattern.permute.xlu0 (!%p463_p2), %v1379_v0  ;;  %v528_v7 = vld [vmem:[%s1764_s2] sm:$0xf] (!%p463_p2)  ;;  %s1380_s17 = smov (!%p463_p2), 16   ;;  %v1559_v29 = vld [vmem:[%s1763_s1 + $0x8] sm:$0xff] (!%p463_p2)  ;;  %vm753_vm10 = vcmask (!%p463_p2), 1043456  }
   0x8   : > { %537 = vperm.xlu0 (!%p463_p2), %1364, %v534_v1   ;;  %792 = vmatprep.mubr.bf16.mxu1 (!%p463_p2), %v1379_v0  ;;  %s1381_s18 = smov (!%p463_p2), 17   ;;  %s1382_s19 = smov (!%p463_p2), 15   ;;  %v806_v17 = vld [vmem:[%s1769_s7] sm:$0xf] (!%p463_p2)  ;;  %v1546_v23 = vshrl.u32 (!%p463_p2), %v599_v20, 7  ;;  %v1548_v24 = vand.u32 (!%p463_p2), 127, %v599_v20 }
   0x9   : > { %1365 = vset.pattern.permute.xlu1 (!%p463_p2), %v1379_v0  ;;  %s1383_s20 = smov (!%p463_p2), 1   ;;  %s1384_s23 = smov (!%p463_p2), 127   ;;  %v743_v18 = vld [vmem:[%s1767_s5] sm:$0xff] (!%p463_p2)  ;;  %vm749_vm11 = vcmask (!%p463_p2), 588800   ;;  %vm812_vm12 = vcmask (!%p463_p2), 64512   ;;  %vm992_vm13 = vcmask (!%p463_p2), 261120  }
   0xa   : > { %s1385_s24 = smov (!%p463_p2), 113   ;;  %s1387_s26 = smov (!%p463_p2), 111   ;;  %v868_v19 = vld [vmem:[%s1771_s9] sm:$0xff] (!%p463_p2)  ;;  %v623_v26 = vsub.s32 (!%p463_p2), 1, %v1546_v23  ;;  %vm618_vm2 = vcmp.lt.s32.totalorder (!%p463_p2), %v1548_v24, 16  ;;  %v606_v30 = vsub.s32 (!%p463_p2), 0, %v1546_v23 }
   0xb   : > { %v1554_v28 = vld [vmem:[%s1763_s1] sm:$0xff] (!%p463_p2)  ;;  %v657_v31 = vsub.s32 (!%p463_p2), 3, %v1546_v23  ;;  %v640_v32 = vsub.s32 (!%p463_p2), 2, %v1546_v23  ;;  %v674_v36 = vsub.s32 (!%p463_p2), 5, %v1546_v23  ;;  %vm635_vm3 = vcmp.lt.s32.totalorder (!%p463_p2), %v1548_v24, 15 }
   0xc   : > { %v624_v33 = vrot.slane (!%p463_p2), %v1554_v28, %v623_v26  ;;  %v628_v37 = vrot.slane (!%p463_p2), %v1559_v29, %v623_v26  ;;  %vm601_vm4 = vcmp.lt.s32.totalorder (!%p463_p2), %v1548_v24, 17  ;;  %v607_v40 = vrot.slane (!%p463_p2), %v1554_v28, %v606_v30 }
   0xd   : > { %vm652_vm5 = vcmp.lt.s32.totalorder (!%p463_p2), %v1548_v24, 1  ;;  %v662_v41 = vrot.slane (!%p463_p2), %v1559_v29, %v657_v31  ;;  %v611_v42 = vrot.slane (!%p463_p2), %v1559_v29, %v606_v30  ;;  %v645_v43 = vrot.slane (!%p463_p2), %v1559_v29, %v640_v32 }
   0xe   : > { %s1782_s22 = smov (!%p512_p3, %s1304_s22), 1  ;;  %v658_v44 = vrot.slane %v1554_v28, %v657_v31  ;;  %vm669_vm6 = vcmp.lt.s32.totalorder %v1548_v24, 127  ;;  %v1578_v48 = vrot.slane %v1559_v29, %v674_v36  ;;  %v641_v58 = vrot.slane %v1554_v28, %v640_v32 }
   0xf   : > { %s1333_s25 = sshll.u32 %s1782_s22, 3  ;;  %vm686_vm7 = vcmp.lt.s32.totalorder %v1548_v24, 113  ;;  %vm703_vm8 = vcmp.lt.s32.totalorder %v1548_v24, 112  ;;  %vm720_vm9 = vcmp.lt.s32.totalorder %v1548_v24, 111  ;;  %vm1121_vm14 = vcmask 130048  }
  0x10   : > { %s516_s29 = scalar_lea.vmem %s1780_s28, %s1333_s25  ;;  %s1386_s25 = smov 112  }
  0x11   : > { %v1494_v2 = vld [vmem:[%s516_s29] sm:$0xff] }
  0x12   : > { %v1498_v3 = vcombine.high %v1494_v2, %v1494_v2  ;;  %v532_v4 = vpack.c.bf16 %v1494_v2, %v1494_v2 }
  0x14   : > { %v533_v5 = vpack.c.bf16 %v1498_v3, %v1498_v3  ;;  %v546_v6 = vsel %vm544_vm0, %v532_v4, 0 }
  0x16   : > { %1313 = vmatprep.subr.msk.bf16.mxu0 %vm544_vm0, %v533_v5  ;;  %v1590_v5 = vrot.slane %v1554_v28, %v674_v36  ;;  %v1627_v36 = vld [vmem:[%s1763_s1 + $0x18] ss:$0 sm:$0xff] }
  0x17   : > { %552 = vmatpush1.bf16.msra.mxu0 %v546_v6 }
  0x1a   : > { %1314 = vmatmul.mubr.msk.bf16.vlgmr.msra.gmra.mrb[0].mxu0 %vm540_vm1, %v528_v7  ;;  %v691_v7 = vsub.s32 6, %v1546_v23 }
  0x1b   : > { %854 = vmatprep.mubr.bf16.mxu0 %v1379_v0 }
  0x87   : > { %v538_v8 = vpop.permute.xlu0 %537 }
  0xed   : > { %v585_v9 = vpop.f32.mrb[0].mxu0 }
  0xee   : > { %v586_v10 = vadd.f32 %v585_v9, %v538_v8  ;;  %v587_v11 = vpop.f32.mrb[1].mxu0 }
  0xef   : > { %v589_v12 = vpop.f32.mrb[2].mxu0  ;;  %v588_v14 = vadd.f32 %v587_v11, %v538_v8  ;;  %v708_v11 = vsub.s32 7, %v1546_v23 }
  0xf0   : > { %v1511_v13 = vmax.f32 %v586_v10, 0.0  ;;  %v590_v15 = vpop.f32.mrb[3].mxu0 }
  0xf1   : > { %v1515_v16 = vmax.f32 %v588_v14, 0.0  ;;  %v1609_v23 = vrot.slane %v1559_v29, %v708_v11 }
  0xf2   : > { %614 = vrot.lane.b32.xlu1 %v1511_v13, %s1380_s17  ;;  %595 = vrot.lane.b32.xlu0 %v1511_v13, %s1381_s18 }
  0xf6   : > { %631 = vrot.lane.b32.xlu1 %v1511_v13, %s1382_s19  ;;  %616 = vrot.lane.b32.xlu0 %v1515_v16, %s1380_s17 }
  0xfa   : > { %648 = vrot.lane.b32.xlu1 %v1511_v13, %s1383_s20  ;;  %633 = vrot.lane.b32.xlu0 %v1515_v16, %s1382_s19 }
  0xfe   : > { %597 = vrot.lane.b32.xlu1 %v1515_v16, %s1381_s18  ;;  %650 = vrot.lane.b32.xlu0 %v1515_v16, %s1383_s20  ;;  %s1334_s20 = sshll.u32 %s1782_s22, 5 }
  0xff   : > { %s521_s28 = scalar_lea.vmem %s1778_s16, %s1334_s20 }
 0x102   : > { %665 = vrot.lane.b32.xlu1 %v1511_v13, %s1384_s23  ;;  %667 = vrot.lane.b32.xlu0 %v1515_v16, %s1384_s23 }
 0x106   : > { %682 = vrot.lane.b32.xlu1 %v1511_v13, %s1385_s24  ;;  %684 = vrot.lane.b32.xlu0 %v1515_v16, %s1385_s24 }
 0x10a   : > { %699 = vrot.lane.b32.xlu1 %v1511_v13, %s1386_s25  ;;  %701 = vrot.lane.b32.xlu0 %v1515_v16, %s1386_s25 }
 0x10e   : > { %716 = vrot.lane.b32.xlu1 %v1511_v13, %s1387_s26  ;;  %718 = vrot.lane.b32.xlu0 %v1515_v16, %s1387_s26 }
 0x112   : > { %809 = vperm.xlu0 %1364, %v806_v17   ;;  %746 = vperm.xlu1 %1365, %v743_v18   ;;  %v692_v18 = vrot.slane %v1554_v28, %v691_v7 }
 0x116   : > { %871 = vperm.xlu1 %1365, %v868_v19   ;;  %v696_v19 = vrot.slane %v1559_v29, %v691_v7 }
 0x164   : > { %v615_v21 = vpop.permute.xlu1 %614  ;;  %v596_v22 = vpop.permute.xlu0 %595 }
 0x168   : > { %v632_v25 = vpop.permute.xlu1 %631  ;;  %v617_v27 = vpop.permute.xlu0 %616 }
 0x169   : > { %v619_v38 = vsel %vm618_vm2, %v615_v21, %v617_v27  ;;  %v620_v39 = vsel %vm618_vm2, %v617_v27, %v615_v21 }
 0x16a   : > { %v629_v45 = vmul.f32 %v624_v33, %v620_v39  ;;  %v630_v49 = vmul.f32 %v628_v37, %v619_v38 }
 0x16c   : > { %v649_v34 = vpop.permute.xlu1 %648  ;;  %v634_v35 = vpop.permute.xlu0 %633 }
 0x16d   : > { %v636_v50 = vsel %vm635_vm3, %v632_v25, %v634_v35  ;;  %v637_v59 = vsel %vm635_vm3, %v634_v35, %v632_v25  ;;  %v1622_v35 = vld [vmem:[%s1763_s1 + $0x10] ss:$0 sm:$0xff] }
 0x16e   : > { %v647_v60 = vmul.f32 %v645_v43, %v636_v50  ;;  %v646_v12 = vmul.f32 %v641_v58, %v637_v59 }
 0x170   : > { %v598_v46 = vpop.permute.xlu1 %597  ;;  %v651_v47 = vpop.permute.xlu0 %650 }
 0x171   : > { %v602_v51 = vsel %vm601_vm4, %v596_v22, %v598_v46  ;;  %v603_v52 = vsel %vm601_vm4, %v598_v46, %v596_v22  ;;  %v653_v53 = vsel %vm652_vm5, %v649_v34, %v651_v47  ;;  %v654_v55 = vsel %vm652_vm5, %v651_v47, %v649_v34  ;;  %v594_v47 = vld [vmem:[%s1766_s4] sm:$0xf] }
 0x172   : > { %v612_v54 = vmul.f32 %v607_v40, %v603_v52  ;;  %v664_v56 = vmul.f32 %v662_v41, %v653_v53  ;;  %v613_v57 = vmul.f32 %v611_v42, %v602_v51  ;;  %v663_v4 = vmul.f32 %v658_v44, %v654_v55 }
 0x173   : > { %v1606_v22 = vrot.slane %v1554_v28, %v708_v11 }
 0x174   : > { %v666_v61 = vpop.permute.xlu1 %665  ;;  %v668_v62 = vpop.permute.xlu0 %667  ;;  %v734_v63 = vpack.c.bf16 %v630_v49, %v613_v57  ;;  %v733_v1 = vpack.c.bf16 %v629_v45, %v612_v54  ;;  %v736_v10 = vpack.c.bf16 %v664_v56, %v647_v60  ;;  %v735_v20 = vpack.c.bf16 %v663_v4, %v646_v12 }
 0x175   : > { %v671_v6 = vsel %vm669_vm6, %v668_v62, %v666_v61  ;;  %v670_v8 = vsel %vm669_vm6, %v666_v61, %v668_v62  ;;  %v803_v61 = vld [vmem:[%s1768_s6] sm:$0x3] }
 0x176   : > { %v681_v9 = vmul.f32 %v1578_v48, %v671_v6  ;;  %760 = vmatprep.subr.bf16.mxu1 %v734_v63  ;;  %v680_v17 = vmul.f32 %v1590_v5, %v670_v8 }
 0x177   : > { %761 = vmatpush1.bf16.msra.mxu1 %v733_v1 }
 0x178   : > { %v683_v14 = vpop.permute.xlu1 %682  ;;  %762 = vmatprep.subr.bf16.mxu1 %v736_v10  ;;  %v685_v15 = vpop.permute.xlu0 %684  ;;  %v738_v21 = vpack.c.bf16 %v681_v9, %v1515_v16  ;;  %v737_v32 = vpack.c.bf16 %v680_v17, %v1511_v13 }
 0x179   : > { %v687_v25 = vsel %vm686_vm7, %v683_v14, %v685_v15  ;;  %v688_v26 = vsel %vm686_vm7, %v685_v15, %v683_v14  ;;  %v865_v15 = vld [vmem:[%s1770_s8] sm:$0xf] }
 0x17a   : > { %v697_v28 = vmul.f32 %v692_v18, %v687_v25  ;;  %v698_v33 = vmul.f32 %v696_v19, %v688_v26 }
 0x17b   : > { %763 = vmatpush1.bf16.msra.mxu1 %v735_v20 }
 0x17c   : > { %v700_v27 = vpop.permute.xlu1 %699  ;;  %764 = vmatprep.subr.bf16.mxu1 %v738_v21  ;;  %v702_v30 = vpop.permute.xlu0 %701 }
 0x17d   : > { %v704_v31 = vsel %vm703_vm8, %v700_v27, %v702_v30  ;;  %v705_v16 = vsel %vm703_vm8, %v702_v30, %v700_v27 }
 0x17e   : > { %v714_v29 = vmul.f32 %v1606_v22, %v704_v31  ;;  %v715_v34 = vmul.f32 %v1609_v23, %v705_v16  ;;  %v958_v31 = vld [vmem:[%s1773_s11] sm:$0xff]  ;;  %v959_v16 = vld [vmem:[%s1773_s11 + $0x8] sm:$0xff] }
 0x17f   : > { %765 = vmatpush1.bf16.msra.mxu1 %v737_v32  ;;  %v960_v32 = vld [vmem:[%s1773_s11 + $0x10] sm:$0xff] }
 0x180   : > { %v717_v13 = vpop.permute.xlu1 %716  ;;  %v719_v37 = vpop.permute.xlu0 %718  ;;  %v740_v38 = vpack.c.bf16 %v715_v34, %v698_v33  ;;  %v739_v39 = vpack.c.bf16 %v714_v29, %v697_v28  ;;  %v961_v28 = vld [vmem:[%s1773_s11 + $0x18] sm:$0xff]  ;;  %v1104_v33 = vld [vmem:[%s1777_s15] sm:$0xff]  ;;  %v1105_v29 = vld [vmem:[%s1777_s15 + $0x8] sm:$0xff] }
 0x181   : > { %v721_v40 = vsel %vm720_vm9, %v717_v13, %v719_v37  ;;  %v722_v41 = vsel %vm720_vm9, %v719_v37, %v717_v13  ;;  %v1174_v34 = vld [vmem:[%s1775_s13] sm:$0xff]  ;;  %v1175_v13 = vld [vmem:[%s1775_s13 + $0x8] sm:$0xff] }
 0x182   : > { %v731_v42 = vmul.f32 %v1622_v35, %v721_v40  ;;  %v732_v43 = vmul.f32 %v1627_v36, %v722_v41  ;;  %766 = vmatprep.subr.bf16.mxu1 %v740_v38 }
 0x183   : > { %767 = vmatpush1.bf16.msra.mxu1 %v739_v39 }
 0x184   : > { %v741_v44 = vpack.c.bf16 %v731_v42, %v731_v42  ;;  %v742_v45 = vpack.c.bf16 %v732_v43, %v732_v43 }
 0x186   : > { %1317 = vmatprep.subr.msk.bf16.mxu1 %vm753_vm10, %v742_v45  ;;  %v755_v46 = vsel %vm753_vm10, %v741_v44, 0 }
 0x187   : > { %769 = vmatpush1.bf16.msra.mxu1 %v755_v46 }
 0x18a   : > { %1318 = vmatmul.mubr.msk.bf16.vlgmr.msra.gmra.mrb[0].mxu1 %vm749_vm11, %v594_v47 }
 0x18b   : > { %1157 = vmatprep.mubr.bf16.mxu1 %v1379_v0 }
 0x191   : > { %v747_v49 = vpop.permute.xlu1 %746  ;;  %v810_v62 = vpop.permute.xlu0 %809 }
 0x195   : > { %v872_v17 = vpop.permute.xlu1 %871 }
 0x25d   : > { %v794_v50 = vpop.f32.mrb[0].mxu1 }
 0x25e   : > { %v795_v51 = vadd.f32 %v794_v50, %v747_v49  ;;  %v796_v52 = vpop.f32.mrb[1].mxu1 }
 0x25f   : > { %v797_v53 = vadd.f32 %v796_v52, %v747_v49  ;;  %v798_v54 = vpop.f32.mrb[2].mxu1 }
 0x260   : > { %v801_v55 = vmax.f32 %v795_v51, 0.0  ;;  %v799_v56 = vpop.f32.mrb[3].mxu1 }
 0x261   : > { %v802_v57 = vmax.f32 %v797_v53, 0.0 }
 0x262   : > { %v804_v58 = vpack.c.bf16 %v801_v55, %v801_v55 }
 0x263   : > { %v805_v59 = vpack.c.bf16 %v802_v57, %v802_v57 }
 0x264   : > { %v817_v60 = vsel %vm753_vm10, %v804_v58, 0 }
 0x265   : > { %1319 = vmatprep.subr.msk.bf16.mxu0 %vm753_vm10, %v805_v59 }
 0x266   : > { %823 = vmatpush1.bf16.msra.mxu0 %v817_v60 }
 0x269   : > { %1320 = vmatmul.mubr.msk.bf16.vlgmr.msra.gmra.mrb[4].mxu0 %vm812_vm12, %v803_v61 }
 0x26a   : > { %915 = vmatprep.mubr.bf16.mxu0 %v1379_v0 }
 0x33c   : > { %v856_v63 = vpop.f32.mrb[4].mxu0 }
 0x33d   : > { %v857_v1 = vadd.f32 %v856_v63, %v810_v62  ;;  %v858_v4 = vpop.f32.mrb[5].mxu0 }
 0x33e   : > { %v859_v6 = vadd.f32 %v858_v4, %v810_v62  ;;  %v860_v7 = vpop.f32.mrb[6].mxu0 }
 0x33f   : > { %v863_v8 = vmax.f32 %v857_v1, 0.0  ;;  %v861_v9 = vpop.f32.mrb[7].mxu0  ;;  %v1367_v1 = vld [vmem:[%s1772_s10] sm:$0xff]  }
 0x340   : > { %v864_v10 = vmax.f32 %v859_v6, 0.0 }
 0x341   : > { %v866_v11 = vpack.c.bf16 %v863_v8, %v863_v8 }
 0x342   : > { %v867_v12 = vpack.c.bf16 %v864_v10, %v864_v10 }
 0x343   : > { %v878_v14 = vsel %vm544_vm0, %v866_v11, 0 }
 0x344   : > { %1321 = vmatprep.subr.msk.bf16.mxu0 %vm544_vm0, %v867_v12 }
 0x345   : > { %884 = vmatpush1.bf16.msra.mxu0 %v878_v14 }
 0x348   : > { %1322 = vmatmul.mubr.msk.bf16.vlgmr.msra.gmra.mrb[8].mxu0 %vm540_vm1, %v865_v15 }
 0x349   : > { %1031 = vmatprep.mubr.bf16.mxu0 %v1379_v0 }
 0x41b   : > { %v917_v18 = vpop.f32.mrb[8].mxu0 }
 0x41c   : > { %v918_v19 = vadd.f32 %v917_v18, %v872_v17  ;;  %v919_v20 = vpop.f32.mrb[9].mxu0 }
 0x41d   : > { %v920_v21 = vadd.f32 %v919_v20, %v872_v17  ;;  %v921_v25 = vpop.f32.mrb[10].mxu0 }
 0x41e   : > { %v924_v26 = vmax.f32 %v918_v19, 0.0  ;;  %v922_v27 = vpop.f32.mrb[11].mxu0 }
 0x41f   : > { %v925_v30 = vmax.f32 %v920_v21, 0.0 }
 0x420   : > { %930 = vrot.lane.b32.xlu0 %v924_v26, %s1384_s23 }
 0x421   : > { %932 = vrot.lane.b32.xlu1 %v925_v30, %s1384_s23 }
 0x424   : > { %938 = vrot.lane.b32.xlu0 %v924_v26, %s1386_s25 }
 0x425   : > { %940 = vrot.lane.b32.xlu1 %v925_v30, %s1386_s25 }
 0x428   : > { %946 = vrot.lane.b32.xlu0 %v924_v26, %s1387_s26 }
 0x429   : > { %948 = vrot.lane.b32.xlu1 %v925_v30, %s1387_s26 }
 0x42c   : > { %1062 = vrot.lane.b32.xlu0 %v1494_v2, %s1384_s23 }
 0x42d   : > { %1064 = vrot.lane.b32.xlu1 %v1498_v3, %s1384_s23 }
 0x430   : > { %1078 = vrot.lane.b32.xlu0 %v1494_v2, %s1387_s26 }
 0x431   : > { %1080 = vrot.lane.b32.xlu1 %v1498_v3, %s1387_s26 }
 0x434   : > { %1070 = vrot.lane.b32.xlu0 %v1494_v2, %s1386_s25 }
 0x435   : > { %1072 = vrot.lane.b32.xlu1 %v1498_v3, %s1386_s25 }
 0x438   : > { %964 = vperm.xlu0 %1364, %v958_v31  }
 0x439   : > { %969 = vperm.xlu1 %1365, %v959_v16  }
 0x43c   : > { %974 = vperm.xlu0 %1364, %v960_v32  }
 0x43d   : > { %979 = vperm.xlu1 %1365, %v961_v28  }
 0x440   : > { %1108 = vperm.xlu0 %1364, %v1104_v33  }
 0x441   : > { %1113 = vperm.xlu1 %1365, %v1105_v29  }
 0x444   : > { %1178 = vperm.xlu0 %1364, %v1174_v34  }
 0x445   : > { %1183 = vperm.xlu1 %1365, %v1175_v13  }
 0x492   : > { %v931_v37 = vpop.permute.xlu0 %930 }
 0x493   : > { %v933_v38 = vpop.permute.xlu1 %932 }
 0x494   : > { %v934_v39 = vsel %vm669_vm6, %v931_v37, %v933_v38  ;;  %v935_v40 = vsel %vm669_vm6, %v933_v38, %v931_v37 }
 0x495   : > { %v936_v41 = vmul.f32 %v934_v39, %v1590_v5  ;;  %v937_v42 = vmul.f32 %v935_v40, %v1578_v48 }
 0x496   : > { %v939_v43 = vpop.permute.xlu0 %938 }
 0x497   : > { %v954_v44 = vpack.c.bf16 %v936_v41, %v924_v26  ;;  %v941_v45 = vpop.permute.xlu1 %940  ;;  %v955_v46 = vpack.c.bf16 %v937_v42, %v925_v30 }
 0x498   : > { %v942_v47 = vsel %vm703_vm8, %v939_v43, %v941_v45  ;;  %v943_v49 = vsel %vm703_vm8, %v941_v45, %v939_v43 }
 0x499   : > { %999 = vmatprep.subr.bf16.mxu0 %v955_v46  ;;  %v944_v54 = vmul.f32 %v942_v47, %v1606_v22  ;;  %v945_v55 = vmul.f32 %v943_v49, %v1609_v23 }
 0x49a   : > { %1000 = vmatpush1.bf16.msra.mxu0 %v954_v44  ;;  %v947_v50 = vpop.permute.xlu0 %946 }
 0x49b   : > { %v949_v51 = vpop.permute.xlu1 %948 }
 0x49c   : > { %v950_v52 = vsel %vm720_vm9, %v947_v50, %v949_v51  ;;  %v951_v53 = vsel %vm720_vm9, %v949_v51, %v947_v50 }
 0x49d   : > { %v952_v56 = vmul.f32 %v1622_v35, %v950_v52  ;;  %v953_v57 = vmul.f32 %v1627_v36, %v951_v53 }
 0x49e   : > { %v1063_v58 = vpop.permute.xlu0 %1062 }
 0x49f   : > { %v956_v59 = vpack.c.bf16 %v952_v56, %v944_v54  ;;  %v957_v60 = vpack.c.bf16 %v953_v57, %v945_v55  ;;  %v1065_v61 = vpop.permute.xlu1 %1064 }
 0x4a0   : > { %v1066_v62 = vsel %vm669_vm6, %v1063_v58, %v1065_v61  ;;  %v1067_v63 = vsel %vm669_vm6, %v1065_v61, %v1063_v58 }
 0x4a1   : > { %1001 = vmatprep.subr.bf16.mxu0 %v957_v60  ;;  %v1068_v4 = vmul.f32 %v1066_v62, %v1590_v5  ;;  %v1069_v6 = vmul.f32 %v1067_v63, %v1578_v48 }
 0x4a2   : > { %1002 = vmatpush1.bf16.msra.mxu0 %v956_v59  ;;  %v1079_v7 = vpop.permute.xlu0 %1078  ;;  %v1370_v59 = vld [vmem:[%s1774_s12] sm:$0xff]  }
 0x4a3   : > { %v1081_v8 = vpop.permute.xlu1 %1080  ;;  %v1088_v11 = vrot.slane %v1068_v4, 4  ;;  %v1089_v12 = vrot.slane %v1069_v6, 4 }
 0x4a4   : > { %v1082_v9 = vsel %vm720_vm9, %v1079_v7, %v1081_v8  ;;  %v1083_v10 = vsel %vm720_vm9, %v1081_v8, %v1079_v7 }
 0x4a5   : > { %1325 = vmatmul.mubr.msk.bf16.vlgmr.msra.gmra.mrb[12].mxu0 %vm992_vm13, %v1367_v1  ;;  %v1084_v14 = vmul.f32 %v1622_v35, %v1082_v9  ;;  %v1085_v5 = vmul.f32 %v1627_v36, %v1083_v10  ;;  %v1098_v21 = vsel %vm753_vm10, %v1494_v2, %v1088_v11  ;;  %v1368_v35 = vld [vmem:[%s1772_s10 + $0x8] sm:$0xff]   ;;  %v1099_v26 = vsel %vm753_vm10, %v1498_v3, %v1089_v12  ;;  %v1369_v2 = vld [vmem:[%s1776_s14] sm:$0xff]  }
 0x4a6   : > { %1041 = vmatprep.mubr.bf16.mxu0 %v1379_v0  ;;  %v1071_v17 = vpop.permute.xlu0 %1070 }
 0x4a7   : > { %v1094_v48 = vrot.slane %v1084_v14, 4  ;;  %v1095_v15 = vrot.slane %v1085_v5, 4  ;;  %v1073_v18 = vpop.permute.xlu1 %1072 }
 0x4a8   : > { %v1074_v19 = vsel %vm703_vm8, %v1071_v17, %v1073_v18  ;;  %v1075_v20 = vsel %vm703_vm8, %v1073_v18, %v1071_v17 }
 0x4a9   : > { %v1076_v36 = vmul.f32 %v1074_v19, %v1606_v22  ;;  %v1077_v25 = vmul.f32 %v1075_v20, %v1609_v23 }
 0x4ab   : > { %v1100_v27 = vsel %vm753_vm10, %v1076_v36, %v1094_v48  ;;  %v1101_v30 = vsel %vm753_vm10, %v1077_v25, %v1095_v15 }
 0x4ac   : > { %v1103_v24 = vpack.c.bf16 %v1101_v30, %v1099_v26  ;;  %v1102_v31 = vpack.c.bf16 %v1100_v27, %v1098_v21 }
 0x4ad   : > { %1326 = vmatmul.mubr.msk.bf16.gmra.mrb[16].mxu0 %vm992_vm13, %v1368_v35 }
 0x4ae   : > { %1125 = vmatprep.subr.bf16.mxu1 %v1103_v24 }
 0x4af   : > { %1126 = vmatpush1.bf16.msra.mxu1 %v1102_v31 }
 0x4b2   : > { %1328 = vmatmul.mubr.msk.bf16.vlgmr.msra.gmra.mrb[4].mxu1 %vm1121_vm14, %v1369_v2 }
 0x4b3   : > { %1226 = vmatprep.mubr.bf16.mxu1 %v1379_v0 }
 0x4b7   : > { %v965_v22 = vpop.permute.xlu0 %964 }
 0x4b8   : > { %v970_v32 = vpop.permute.xlu1 %969 }
 0x4bb   : > { %v975_v42 = vpop.permute.xlu0 %974 }
 0x4bc   : > { %v980_v46 = vpop.permute.xlu1 %979 }
 0x4bf   : > { %v1109_v60 = vpop.permute.xlu0 %1108 }
 0x4c0   : > { %v1114_v61 = vpop.permute.xlu1 %1113 }
 0x4c3   : > { %v1179_v62 = vpop.permute.xlu0 %1178 }
 0x4c4   : > { %v1184_v63 = vpop.permute.xlu1 %1183  ;;  %v1335_v1 = vadd.f32 %v1179_v62, %v1109_v60 }
 0x4c5   : > { %v1339_v6 = vadd.f32 %v1184_v63, %v1114_v61 }
 0x578   : > { %v1033_v3 = vpop.f32.mrb[12].mxu0 }
 0x579   : > { %v1034_v23 = vadd.f32 %v1033_v3, %v965_v22  ;;  %v1035_v16 = vpop.f32.mrb[13].mxu0 }
 0x57a   : > { %v1036_v28 = vadd.f32 %v1035_v16, %v965_v22  ;;  %v1037_v33 = vpop.f32.mrb[14].mxu0 }
 0x57b   : > { %v1038_v29 = vadd.f32 %v1037_v33, %v970_v32  ;;  %v1039_v34 = vpop.f32.mrb[15].mxu0  ;;  %v1052_v37 = vmax.f32 %v1034_v23, 0.0 }
 0x57c   : > { %v1040_v13 = vadd.f32 %v1039_v34, %v970_v32  ;;  %v1053_v39 = vmax.f32 %v1036_v28, 0.0 }
 0x57d   : > { %v1054_v38 = vmax.f32 %v1038_v29, 0.0 }
 0x57e   : > { %v1055_v40 = vmax.f32 %v1040_v13, 0.0 }
 0x57f   : > { %v1170_v41 = vpack.c.bf16 %v1054_v38, %v1052_v37 }
 0x580   : > { %v1171_v43 = vpack.c.bf16 %v1055_v40, %v1053_v39  ;;  %v1043_v44 = vpop.f32.mrb[16].mxu0 }
 0x581   : > { %v1044_v45 = vadd.f32 %v1043_v44, %v975_v42  ;;  %v1045_v0 = vpop.f32.mrb[17].mxu0 }
 0x582   : > { %v1046_v47 = vadd.f32 %v1045_v0, %v975_v42  ;;  %v1047_v49 = vpop.f32.mrb[18].mxu0  ;;  %1194 = vmatprep.subr.bf16.mxu1 %v1171_v43 }
 0x583   : > { %v1048_v50 = vadd.f32 %v1047_v49, %v980_v46  ;;  %v1049_v51 = vpop.f32.mrb[19].mxu0  ;;  %1195 = vmatpush1.bf16.msra.mxu1 %v1170_v41  ;;  %v1056_v53 = vmax.f32 %v1044_v45, 0.0 }
 0x584   : > { %v1050_v52 = vadd.f32 %v1049_v51, %v980_v46  ;;  %v1057_v55 = vmax.f32 %v1046_v47, 0.0 }
 0x585   : > { %v1058_v54 = vmax.f32 %v1048_v50, 0.0 }
 0x586   : > { %v1059_v56 = vmax.f32 %v1050_v52, 0.0 }
 0x587   : > { %v1172_v57 = vpack.c.bf16 %v1058_v54, %v1056_v53 }
 0x588   : > { %v1173_v58 = vpack.c.bf16 %v1059_v56, %v1057_v55 }
 0x58a   : > { %1196 = vmatprep.subr.bf16.mxu1 %v1173_v58 }
 0x58b   : > { %1197 = vmatpush1.bf16.msra.mxu1 %v1172_v57 }
 0x58e   : > { %1330 = vmatmul.mubr.msk.bf16.vlgmr.msra.gmra.mrb[4].mxu1 %vm992_vm13, %v1370_v59 }
 0x661   : > { %v1228_v4 = vpop.f32.mrb[4].mxu1 }
 0x662   : > { %v1336_v7 = vadd.f32 %v1335_v1, %v1228_v4  ;;  %v1230_v8 = vpop.f32.mrb[5].mxu1 }
 0x663   : > { %v1338_v9 = vadd.f32 %v1335_v1, %v1230_v8  ;;  %v1232_v10 = vpop.f32.mrb[6].mxu1 }
 0x664   : > { %v1241_v11 = vmax.f32 %v1336_v7, 0.0  ;;  %v1340_v12 = vadd.f32 %v1339_v6, %v1232_v10  ;;  %v1234_v14 = vpop.f32.mrb[7].mxu1 }
 0x665   : > { %v1242_v5 = vmax.f32 %v1338_v9, 0.0  ;;  %v1342_v48 = vadd.f32 %v1339_v6, %v1234_v14 }
 0x666   : > { %1245 = vst [vmem:[%s521_s28] sm:$0xff] %v1241_v11  ;;  %v1243_v15 = vmax.f32 %v1340_v12, 0.0 }
 0x667   : > { %1246 = vst [vmem:[%s521_s28 + $0x8] sm:$0xff] %v1242_v5  ;;  %v1244_v17 = vmax.f32 %v1342_v48, 0.0 }
 0x668   : > { %1247 = vst [vmem:[%s521_s28 + $0x10] sm:$0xff] %v1243_v15 }
 0x669   : > { %1248 = vst [vmem:[%s521_s28 + $0x18] sm:$0xff] %v1244_v17 }
 0x66a PF: > { %s26_s21 = sadd.s32 1, %s1377_s21  }
 0x66b   : > { %p23_p4 = scmp.ge.s32.totalorder %s26_s21, 4  }
 0x66d   :  { %25 = sbr.rel (!%p23_p4) target bundleno = 2 (0x2), region = 114 }

</bundles_post_ra>
